<compile_context>
chip_gen: v5e
topology: v5e:2x2
jax: 0.10.0
libtpu: 0.0.40
codegen_flags: <defaults>
</compile_context>

<pallas_src>
import functools

import jax
import jax.numpy as jnp
from jax import lax
from jax.experimental import pallas as pl
from jax.experimental.pallas import tpu as pltpu

_LN_EPS = 1e-5
_LEAKY_SLOPE = 0.01          # PyTorch nn.LeakyReLU default
_MAX_BLOCK_ROWS = 512        # amortizes per-step overhead / MXU fill on v6e


def _vmem_limit_bytes():
    """Generation-aware scoped-VMEM limit (3/4 of capacity, capped at 96 MiB)."""
    cap = 64 * 1024 * 1024   # conservative fallback == v7x per-TC capacity
    try:
        cap = int(pltpu.get_tpu_info().vmem_capacity_bytes)
    except Exception:
        pass
    return min((cap * 3) // 4, 96 * 1024 * 1024)


def _pick_block_rows(B, N, D, vmem_limit):
    """Row tile: >=2 grid steps when possible (v7x megacore), VMEM-bounded."""
    if B < 16:
        return B  # one full-B tile (sublane rule: block_rows % 8 == 0 or == B)
    half = (((B + 1) // 2) + 7) // 8 * 8          # ceil(B/2) rounded up to 8
    # Double-buffered f32 bytes per row: src + tgt blocks (N*D each) + residual.
    per_row = 8 * (2 * N * D + D)
    vmem_cap = max(8, ((vmem_limit // 2) // per_row) // 8 * 8)
    return max(8, min(half, vmem_cap, _MAX_BLOCK_ROWS))


# ----------------------------------------------------------------------------
# Fused kernel: residual + 4 linears + 3 LayerNorms + LeakyReLUs + clamp
# ----------------------------------------------------------------------------
def _fused_kernel(src_ref, tgt_ref,
                  w1_ref, b1_ref, g1_ref, beta1_ref,
                  w2_ref, b2_ref, g2_ref, beta2_ref,
                  w3_ref, b3_ref, g3_ref, beta3_ref,
                  w4_ref, b4_ref,
                  temp_ref, res_ref,
                  *, inv_n, temp_factor, negative_slope, ln_eps):
    # src_ref / tgt_ref: (rows, N, D) f32 — N on sublanes, D lane-dense.
    s = src_ref[...]
    t = tgt_ref[...]
    # |mean(src) - mean(tgt)|: fold both 1/N scalings into a single multiply.
    residual = jnp.abs(jnp.sum(s, axis=1) - jnp.sum(t, axis=1)) * inv_n  # (rows, D)
    res_ref[...] = residual.astype(res_ref.dtype)

    def layer_norm(h, g_ref, b_ref):
        # nn.LayerNorm semantics: biased variance, eps inside the sqrt.
        mean = jnp.mean(h, axis=-1, keepdims=True)
        c = h - mean
        var = jnp.mean(c * c, axis=-1, keepdims=True)
        inv = lax.rsqrt(var + ln_eps)              # narrow (rows, 1) EUP op
        return (c * inv) * g_ref[...] + b_ref[...]

    def leaky_relu(h):
        return jnp.where(h >= 0, h, negative_slope * h)

    # NOTE: in-kernel f32 matmuls run at the MXU default precision; they match
    # the HIGHEST-precision reference to ~1e-3 at these widths.  Pass
    # precision=lax.Precision.HIGHEST here if bit-tighter parity is required.
    h = jnp.dot(residual, w1_ref[...], preferred_element_type=jnp.float32) + b1_ref[...]
    h = leaky_relu(layer_norm(h, g1_ref, beta1_ref))
    h = jnp.dot(h, w2_ref[...], preferred_element_type=jnp.float32) + b2_ref[...]
    h = leaky_relu(layer_norm(h, g2_ref, beta2_ref))
    h = jnp.dot(h, w3_ref[...], preferred_element_type=jnp.float32) + b3_ref[...]
    h = leaky_relu(layer_norm(h, g3_ref, beta3_ref))
    # Final Linear(128 -> 1): elementwise mul + row-reduce (avoids 1-wide matmul).
    temp = jnp.sum(h * w4_ref[...], axis=-1, keepdims=True) + b4_ref[...]
    temp = leaky_relu(temp)
    temp = jnp.clip(temp, 1.0 / temp_factor, 1.0 * temp_factor)
    temp_ref[...] = temp.astype(temp_ref.dtype)


def _replicated_spec(shape):
    n = len(shape)
    return pl.BlockSpec(shape, lambda i, _n=n: (0,) * _n)


def temperature_net_forward(src, tgt, params, *, temp_factor, block_rows=None):
    """TemperatureNet.forward.  src, tgt: (B, D, N) f32 -> ((B, 1), (B, D))."""
    B, D, N = src.shape
    (w1, b1, g1, beta1, w2, b2, g2, beta2, w3, b3, g3, beta3, w4, b4) = params
    H = w1.shape[1]
    w4_row = w4.reshape(1, H)       # (H, 1) -> (1, H): layout plumbing only

    # Host-side re-layout so the reduced point axis N sits on sublanes and the
    # feature axis D is lane-dense inside the kernel.
    src_t = jnp.swapaxes(src, 1, 2)   # (B, N, D)
    tgt_t = jnp.swapaxes(tgt, 1, 2)

    vmem_limit = _vmem_limit_bytes()
    if block_rows is None:
        block_rows = _pick_block_rows(B, N, D, vmem_limit)
    grid = (pl.cdiv(B, block_rows),)

    weight_arrays = (w1, b1, g1, beta1, w2, b2, g2, beta2, w3, b3, g3, beta3,
                     w4_row, b4)
    in_specs = [
        pl.BlockSpec((block_rows, N, D), lambda i: (i, 0, 0)),
        pl.BlockSpec((block_rows, N, D), lambda i: (i, 0, 0)),
    ]
    # Grid-invariant (constant index_map) weight blocks: Pallas keeps them
    # resident across grid steps — no re-DMA after the first step.
    in_specs += [_replicated_spec(a.shape) for a in weight_arrays]

    out_specs = [
        pl.BlockSpec((block_rows, 1), lambda i: (i, 0)),   # temperature
        pl.BlockSpec((block_rows, D), lambda i: (i, 0)),   # residual (lane-dense)
    ]
    out_shape = (
        jax.ShapeDtypeStruct((B, 1), src.dtype),
        jax.ShapeDtypeStruct((B, D), src.dtype),
    )

    param_bytes = sum(int(a.size) for a in weight_arrays)
    cost = pl.CostEstimate(
        flops=int(3 * B * D * N + 2 * B * (D * H + 2 * H * H + H) + 24 * B * H),
        transcendentals=int(3 * B),           # one rsqrt per row per LayerNorm
        bytes_accessed=int(4 * (2 * B * N * D + B * D + B + param_bytes)),
    )

    kernel = functools.partial(
        _fused_kernel,
        inv_n=1.0 / N,
        temp_factor=float(temp_factor),
        negative_slope=_LEAKY_SLOPE,
        ln_eps=_LN_EPS,
    )
    temperature, residual = pl.pallas_call(
        kernel,
        out_shape=out_shape,
        grid_spec=pltpu.PrefetchScalarGridSpec(
            num_scalar_prefetch=0,
            grid=grid,
            in_specs=in_specs,
            out_specs=out_specs,
        ),
        compiler_params=pltpu.CompilerParams(
            dimension_semantics=("parallel",),
            vmem_limit_bytes=vmem_limit,
        ),
        cost_estimate=cost,
    )(src_t, tgt_t, *weight_arrays)
    return temperature, residual


# ----------------------------------------------------------------------------
# Pure-JAX reference (mirrors the PyTorch module exactly)
# ----------------------------------------------------------------------------
def _reference_forward(src, tgt, params, temp_factor):
    (w1, b1, g1, beta1, w2, b2, g2, beta2, w3, b3, g3, beta3, w4, b4) = params
    residual = jnp.abs(jnp.mean(src, axis=2) - jnp.mean(tgt, axis=2))

    def ln(h, g, b):
        mean = jnp.mean(h, axis=-1, keepdims=True)
        c = h - mean
        var = jnp.mean(c * c, axis=-1, keepdims=True)
        return c / jnp.sqrt(var + _LN_EPS) * g + b

    def lrelu(h):
        return jnp.where(h >= 0, h, _LEAKY_SLOPE * h)

    hp = lax.Precision.HIGHEST
    h = lrelu(ln(jnp.dot(residual, w1, precision=hp) + b1, g1, beta1))
    h = lrelu(ln(jnp.dot(h, w2, precision=hp) + b2, g2, beta2))
    h = lrelu(ln(jnp.dot(h, w3, precision=hp) + b3, g3, beta3))
    t = lrelu(jnp.dot(h, w4, precision=hp) + b4)
    t = jnp.clip(t, 1.0 / temp_factor, 1.0 * temp_factor)
    return t, residual


if __name__ == "__main__":
    # args.n_emb_dims = 512, args.temp_factor = 100 (typical config); N points = 16.
    B, D, N = 2, 512, 16
    H = 128
    temp_factor = 100.0

    key = jax.random.PRNGKey(0)
    ks = jax.random.split(key, 10)
    src = jax.random.normal(ks[0], (B, D, N), dtype=jnp.float32)
    tgt = jax.random.normal(ks[1], (B, D, N), dtype=jnp.float32)

    def linear_init(kw, kb, fan_in, fan_out):
        bound = 1.0 / (fan_in ** 0.5)
        w = jax.random.uniform(kw, (fan_in, fan_out), jnp.float32, -bound, bound)
        b = jax.random.uniform(kb, (1, fan_out), jnp.float32, -bound, bound)
        return w, b

    w1, b1 = linear_init(ks[2], ks[3], D, H)
    w2, b2 = linear_init(ks[4], ks[5], H, H)
    w3, b3 = linear_init(ks[6], ks[7], H, H)
    w4, b4 = linear_init(ks[8], ks[9], H, 1)
    g1 = jnp.ones((1, H), jnp.float32); beta1 = jnp.zeros((1, H), jnp.float32)
    g2 = jnp.ones((1, H), jnp.float32); beta2 = jnp.zeros((1, H), jnp.float32)
    g3 = jnp.ones((1, H), jnp.float32); beta3 = jnp.zeros((1, H), jnp.float32)

    params = (w1, b1, g1, beta1, w2, b2, g2, beta2, w3, b3, g3, beta3, w4, b4)

    fwd = jax.jit(functools.partial(temperature_net_forward, temp_factor=temp_factor))
    temperature, residual = fwd(src, tgt, params)
    temperature = jax.block_until_ready(temperature)
    residual = jax.block_until_ready(residual)

    t_ref, r_ref = _reference_forward(src, tgt, params, temp_factor)
    assert temperature.shape == (B, 1) and residual.shape == (B, D)
    assert jnp.allclose(residual, r_ref, atol=1e-5, rtol=1e-5), "residual mismatch"
    assert jnp.allclose(temperature, t_ref, atol=1e-3, rtol=1e-3), "temperature mismatch"

    print("KERNEL_OK")
</pallas_src>

<mosaic_0001>
module attributes {stable_mosaic.version = 11 : i64} {
  func.func @_fused_kernel(%arg0: i32, %arg1: memref<2x16x512xf32, #tpu.memory_space<vmem>>, %arg2: memref<2x16x512xf32, #tpu.memory_space<vmem>>, %arg3: memref<512x128xf32, #tpu.memory_space<vmem>>, %arg4: memref<1x128xf32, #tpu.memory_space<vmem>>, %arg5: memref<1x128xf32, #tpu.memory_space<vmem>>, %arg6: memref<1x128xf32, #tpu.memory_space<vmem>>, %arg7: memref<128x128xf32, #tpu.memory_space<vmem>>, %arg8: memref<1x128xf32, #tpu.memory_space<vmem>>, %arg9: memref<1x128xf32, #tpu.memory_space<vmem>>, %arg10: memref<1x128xf32, #tpu.memory_space<vmem>>, %arg11: memref<128x128xf32, #tpu.memory_space<vmem>>, %arg12: memref<1x128xf32, #tpu.memory_space<vmem>>, %arg13: memref<1x128xf32, #tpu.memory_space<vmem>>, %arg14: memref<1x128xf32, #tpu.memory_space<vmem>>, %arg15: memref<1x128xf32, #tpu.memory_space<vmem>>, %arg16: memref<1x1xf32, #tpu.memory_space<vmem>>, %arg17: memref<2x1xf32, #tpu.memory_space<vmem>>, %arg18: memref<2x512xf32, #tpu.memory_space<vmem>>) attributes {dimension_semantics = [#tpu.dimension_semantics<parallel>], iteration_bounds = array<i64: 1>, scalar_prefetch = 0 : i64, scratch_operands = 0 : i64, tpu.core_type = #tpu.core_type<tc>, window_params = [{transform_indices = @transform_0, window_bounds = array<i64: 2, 16, 512>}, {transform_indices = @transform_1, window_bounds = array<i64: 2, 16, 512>}, {pipeline_mode = #tpu.pipeline_mode<synchronous>, transform_indices = @transform_2, window_bounds = array<i64: 512, 128>}, {pipeline_mode = #tpu.pipeline_mode<synchronous>, transform_indices = @transform_3, window_bounds = array<i64: 1, 128>}, {pipeline_mode = #tpu.pipeline_mode<synchronous>, transform_indices = @transform_4, window_bounds = array<i64: 1, 128>}, {pipeline_mode = #tpu.pipeline_mode<synchronous>, transform_indices = @transform_5, window_bounds = array<i64: 1, 128>}, {pipeline_mode = #tpu.pipeline_mode<synchronous>, transform_indices = @transform_6, window_bounds = array<i64: 128, 128>}, {pipeline_mode = #tpu.pipeline_mode<synchronous>, transform_indices = @transform_7, window_bounds = array<i64: 1, 128>}, {pipeline_mode = #tpu.pipeline_mode<synchronous>, transform_indices = @transform_8, window_bounds = array<i64: 1, 128>}, {pipeline_mode = #tpu.pipeline_mode<synchronous>, transform_indices = @transform_9, window_bounds = array<i64: 1, 128>}, {pipeline_mode = #tpu.pipeline_mode<synchronous>, transform_indices = @transform_10, window_bounds = array<i64: 128, 128>}, {pipeline_mode = #tpu.pipeline_mode<synchronous>, transform_indices = @transform_11, window_bounds = array<i64: 1, 128>}, {pipeline_mode = #tpu.pipeline_mode<synchronous>, transform_indices = @transform_12, window_bounds = array<i64: 1, 128>}, {pipeline_mode = #tpu.pipeline_mode<synchronous>, transform_indices = @transform_13, window_bounds = array<i64: 1, 128>}, {pipeline_mode = #tpu.pipeline_mode<synchronous>, transform_indices = @transform_14, window_bounds = array<i64: 1, 128>}, {pipeline_mode = #tpu.pipeline_mode<synchronous>, transform_indices = @transform_15, window_bounds = array<i64: 1, 1>}, {transform_indices = @transform_16, window_bounds = array<i64: 2, 1>}, {transform_indices = @transform_17, window_bounds = array<i64: 2, 512>}]} {
    %c0 = arith.constant 0 : index
    %c0_0 = arith.constant 0 : index
    %c0_1 = arith.constant 0 : index
    %0 = vector.load %arg1[%c0, %c0_0, %c0_1] : memref<2x16x512xf32, #tpu.memory_space<vmem>>, vector<2x16x512xf32>
    %c0_2 = arith.constant 0 : index
    %c0_3 = arith.constant 0 : index
    %c0_4 = arith.constant 0 : index
    %1 = vector.load %arg2[%c0_2, %c0_3, %c0_4] : memref<2x16x512xf32, #tpu.memory_space<vmem>>, vector<2x16x512xf32>
    %cst = arith.constant dense<0.000000e+00> : vector<2x512xf32>
    %2 = vector.multi_reduction <add>, %0, %cst [1] : vector<2x16x512xf32> to vector<2x512xf32>
    %cst_5 = arith.constant dense<0.000000e+00> : vector<2x512xf32>
    %3 = vector.multi_reduction <add>, %1, %cst_5 [1] : vector<2x16x512xf32> to vector<2x512xf32>
    %4 = arith.subf %2, %3 : vector<2x512xf32>
    %5 = math.absf %4 : vector<2x512xf32>
    %cst_6 = arith.constant 6.250000e-02 : f32
    %6 = vector.broadcast %cst_6 : f32 to vector<2x512xf32>
    %7 = arith.mulf %5, %6 : vector<2x512xf32>
    %c0_7 = arith.constant 0 : index
    %c0_8 = arith.constant 0 : index
    %8 = vector.load %arg18[%c0_7, %c0_8] : memref<2x512xf32, #tpu.memory_space<vmem>>, vector<2x512xf32>
    tpu.vector_store %arg18[%c0_7, %c0_8], %7 {strides = array<i32>} : memref<2x512xf32, #tpu.memory_space<vmem>>, vector<2x512xf32>,
    %c0_9 = arith.constant 0 : index
    %c0_10 = arith.constant 0 : index
    %9 = vector.load %arg3[%c0_9, %c0_10] : memref<512x128xf32, #tpu.memory_space<vmem>>, vector<512x128xf32>
    %cst_11 = arith.constant dense<0.000000e+00> : vector<2x128xf32>
    %10 = tpu.matmul %7, %9, %cst_11 {dimension_numbers = #tpu.dot_dimension_numbers<[1], [0], [0], [1], [0, 0, 1, 1], [], []>} : vector<2x512xf32>, vector<512x128xf32>, vector<2x128xf32> -> vector<2x128xf32>
    %c0_12 = arith.constant 0 : index
    %c0_13 = arith.constant 0 : index
    %11 = vector.load %arg4[%c0_12, %c0_13] : memref<1x128xf32, #tpu.memory_space<vmem>>, vector<1x128xf32>
    %12 = vector.broadcast %11 : vector<1x128xf32> to vector<2x128xf32>
    %13 = arith.addf %10, %12 : vector<2x128xf32>
    %cst_14 = arith.constant dense<0.000000e+00> : vector<2xf32>
    %14 = vector.multi_reduction <add>, %13, %cst_14 [1] : vector<2x128xf32> to vector<2xf32>
    %15 = vector.shape_cast %14 : vector<2xf32> to vector<2x1xf32>
    %cst_15 = arith.constant 1.280000e+02 : f32
    %16 = vector.broadcast %cst_15 : f32 to vector<2x1xf32>
    %17 = arith.divf %15, %16 : vector<2x1xf32>
    %18 = vector.broadcast %17 : vector<2x1xf32> to vector<2x128xf32>
    %19 = arith.subf %13, %18 : vector<2x128xf32>
    %20 = arith.mulf %19, %19 : vector<2x128xf32>
    %cst_16 = arith.constant dense<0.000000e+00> : vector<2xf32>
    %21 = vector.multi_reduction <add>, %20, %cst_16 [1] : vector<2x128xf32> to vector<2xf32>
    %22 = vector.shape_cast %21 : vector<2xf32> to vector<2x1xf32>
    %cst_17 = arith.constant 1.280000e+02 : f32
    %23 = vector.broadcast %cst_17 : f32 to vector<2x1xf32>
    %24 = arith.divf %22, %23 : vector<2x1xf32>
    %cst_18 = arith.constant 9.99999974E-6 : f32
    %25 = vector.broadcast %cst_18 : f32 to vector<2x1xf32>
    %26 = arith.addf %24, %25 : vector<2x1xf32>
    %27 = math.rsqrt %26 : vector<2x1xf32>
    %28 = vector.broadcast %27 : vector<2x1xf32> to vector<2x128xf32>
    %29 = arith.mulf %19, %28 : vector<2x128xf32>
    %c0_19 = arith.constant 0 : index
    %c0_20 = arith.constant 0 : index
    %30 = vector.load %arg5[%c0_19, %c0_20] : memref<1x128xf32, #tpu.memory_space<vmem>>, vector<1x128xf32>
    %31 = vector.broadcast %30 : vector<1x128xf32> to vector<2x128xf32>
    %32 = arith.mulf %29, %31 : vector<2x128xf32>
    %c0_21 = arith.constant 0 : index
    %c0_22 = arith.constant 0 : index
    %33 = vector.load %arg6[%c0_21, %c0_22] : memref<1x128xf32, #tpu.memory_space<vmem>>, vector<1x128xf32>
    %34 = vector.broadcast %33 : vector<1x128xf32> to vector<2x128xf32>
    %35 = arith.addf %32, %34 : vector<2x128xf32>
    %cst_23 = arith.constant 0.000000e+00 : f32
    %36 = vector.broadcast %cst_23 : f32 to vector<2x128xf32>
    %37 = arith.cmpf oge, %35, %36 : vector<2x128xf32>
    %cst_24 = arith.constant 0.00999999977 : f32
    %38 = vector.broadcast %cst_24 : f32 to vector<2x128xf32>
    %39 = arith.mulf %38, %35 : vector<2x128xf32>
    %40 = arith.select %37, %35, %39 : vector<2x128xi1>, vector<2x128xf32>
    %c0_25 = arith.constant 0 : index
    %c0_26 = arith.constant 0 : index
    %41 = vector.load %arg7[%c0_25, %c0_26] : memref<128x128xf32, #tpu.memory_space<vmem>>, vector<128x128xf32>
    %cst_27 = arith.constant dense<0.000000e+00> : vector<2x128xf32>
    %42 = tpu.matmul %40, %41, %cst_27 {dimension_numbers = #tpu.dot_dimension_numbers<[1], [0], [0], [1], [0, 0, 1, 1], [], []>} : vector<2x128xf32>, vector<128x128xf32>, vector<2x128xf32> -> vector<2x128xf32>
    %c0_28 = arith.constant 0 : index
    %c0_29 = arith.constant 0 : index
    %43 = vector.load %arg8[%c0_28, %c0_29] : memref<1x128xf32, #tpu.memory_space<vmem>>, vector<1x128xf32>
    %44 = vector.broadcast %43 : vector<1x128xf32> to vector<2x128xf32>
    %45 = arith.addf %42, %44 : vector<2x128xf32>
    %cst_30 = arith.constant dense<0.000000e+00> : vector<2xf32>
    %46 = vector.multi_reduction <add>, %45, %cst_30 [1] : vector<2x128xf32> to vector<2xf32>
    %47 = vector.shape_cast %46 : vector<2xf32> to vector<2x1xf32>
    %cst_31 = arith.constant 1.280000e+02 : f32
    %48 = vector.broadcast %cst_31 : f32 to vector<2x1xf32>
    %49 = arith.divf %47, %48 : vector<2x1xf32>
    %50 = vector.broadcast %49 : vector<2x1xf32> to vector<2x128xf32>
    %51 = arith.subf %45, %50 : vector<2x128xf32>
    %52 = arith.mulf %51, %51 : vector<2x128xf32>
    %cst_32 = arith.constant dense<0.000000e+00> : vector<2xf32>
    %53 = vector.multi_reduction <add>, %52, %cst_32 [1] : vector<2x128xf32> to vector<2xf32>
    %54 = vector.shape_cast %53 : vector<2xf32> to vector<2x1xf32>
    %cst_33 = arith.constant 1.280000e+02 : f32
    %55 = vector.broadcast %cst_33 : f32 to vector<2x1xf32>
    %56 = arith.divf %54, %55 : vector<2x1xf32>
    %cst_34 = arith.constant 9.99999974E-6 : f32
    %57 = vector.broadcast %cst_34 : f32 to vector<2x1xf32>
    %58 = arith.addf %56, %57 : vector<2x1xf32>
    %59 = math.rsqrt %58 : vector<2x1xf32>
    %60 = vector.broadcast %59 : vector<2x1xf32> to vector<2x128xf32>
    %61 = arith.mulf %51, %60 : vector<2x128xf32>
    %c0_35 = arith.constant 0 : index
    %c0_36 = arith.constant 0 : index
    %62 = vector.load %arg9[%c0_35, %c0_36] : memref<1x128xf32, #tpu.memory_space<vmem>>, vector<1x128xf32>
    %63 = vector.broadcast %62 : vector<1x128xf32> to vector<2x128xf32>
    %64 = arith.mulf %61, %63 : vector<2x128xf32>
    %c0_37 = arith.constant 0 : index
    %c0_38 = arith.constant 0 : index
    %65 = vector.load %arg10[%c0_37, %c0_38] : memref<1x128xf32, #tpu.memory_space<vmem>>, vector<1x128xf32>
    %66 = vector.broadcast %65 : vector<1x128xf32> to vector<2x128xf32>
    %67 = arith.addf %64, %66 : vector<2x128xf32>
    %cst_39 = arith.constant 0.000000e+00 : f32
    %68 = vector.broadcast %cst_39 : f32 to vector<2x128xf32>
    %69 = arith.cmpf oge, %67, %68 : vector<2x128xf32>
    %cst_40 = arith.constant 0.00999999977 : f32
    %70 = vector.broadcast %cst_40 : f32 to vector<2x128xf32>
    %71 = arith.mulf %70, %67 : vector<2x128xf32>
    %72 = arith.select %69, %67, %71 : vector<2x128xi1>, vector<2x128xf32>
    %c0_41 = arith.constant 0 : index
    %c0_42 = arith.constant 0 : index
    %73 = vector.load %arg11[%c0_41, %c0_42] : memref<128x128xf32, #tpu.memory_space<vmem>>, vector<128x128xf32>
    %cst_43 = arith.constant dense<0.000000e+00> : vector<2x128xf32>
    %74 = tpu.matmul %72, %73, %cst_43 {dimension_numbers = #tpu.dot_dimension_numbers<[1], [0], [0], [1], [0, 0, 1, 1], [], []>} : vector<2x128xf32>, vector<128x128xf32>, vector<2x128xf32> -> vector<2x128xf32>
    %c0_44 = arith.constant 0 : index
    %c0_45 = arith.constant 0 : index
    %75 = vector.load %arg12[%c0_44, %c0_45] : memref<1x128xf32, #tpu.memory_space<vmem>>, vector<1x128xf32>
    %76 = vector.broadcast %75 : vector<1x128xf32> to vector<2x128xf32>
    %77 = arith.addf %74, %76 : vector<2x128xf32>
    %cst_46 = arith.constant dense<0.000000e+00> : vector<2xf32>
    %78 = vector.multi_reduction <add>, %77, %cst_46 [1] : vector<2x128xf32> to vector<2xf32>
    %79 = vector.shape_cast %78 : vector<2xf32> to vector<2x1xf32>
    %cst_47 = arith.constant 1.280000e+02 : f32
    %80 = vector.broadcast %cst_47 : f32 to vector<2x1xf32>
    %81 = arith.divf %79, %80 : vector<2x1xf32>
    %82 = vector.broadcast %81 : vector<2x1xf32> to vector<2x128xf32>
    %83 = arith.subf %77, %82 : vector<2x128xf32>
    %84 = arith.mulf %83, %83 : vector<2x128xf32>
    %cst_48 = arith.constant dense<0.000000e+00> : vector<2xf32>
    %85 = vector.multi_reduction <add>, %84, %cst_48 [1] : vector<2x128xf32> to vector<2xf32>
    %86 = vector.shape_cast %85 : vector<2xf32> to vector<2x1xf32>
    %cst_49 = arith.constant 1.280000e+02 : f32
    %87 = vector.broadcast %cst_49 : f32 to vector<2x1xf32>
    %88 = arith.divf %86, %87 : vector<2x1xf32>
    %cst_50 = arith.constant 9.99999974E-6 : f32
    %89 = vector.broadcast %cst_50 : f32 to vector<2x1xf32>
    %90 = arith.addf %88, %89 : vector<2x1xf32>
    %91 = math.rsqrt %90 : vector<2x1xf32>
    %92 = vector.broadcast %91 : vector<2x1xf32> to vector<2x128xf32>
    %93 = arith.mulf %83, %92 : vector<2x128xf32>
    %c0_51 = arith.constant 0 : index
    %c0_52 = arith.constant 0 : index
    %94 = vector.load %arg13[%c0_51, %c0_52] : memref<1x128xf32, #tpu.memory_space<vmem>>, vector<1x128xf32>
    %95 = vector.broadcast %94 : vector<1x128xf32> to vector<2x128xf32>
    %96 = arith.mulf %93, %95 : vector<2x128xf32>
    %c0_53 = arith.constant 0 : index
    %c0_54 = arith.constant 0 : index
    %97 = vector.load %arg14[%c0_53, %c0_54] : memref<1x128xf32, #tpu.memory_space<vmem>>, vector<1x128xf32>
    %98 = vector.broadcast %97 : vector<1x128xf32> to vector<2x128xf32>
    %99 = arith.addf %96, %98 : vector<2x128xf32>
    %cst_55 = arith.constant 0.000000e+00 : f32
    %100 = vector.broadcast %cst_55 : f32 to vector<2x128xf32>
    %101 = arith.cmpf oge, %99, %100 : vector<2x128xf32>
    %cst_56 = arith.constant 0.00999999977 : f32
    %102 = vector.broadcast %cst_56 : f32 to vector<2x128xf32>
    %103 = arith.mulf %102, %99 : vector<2x128xf32>
    %104 = arith.select %101, %99, %103 : vector<2x128xi1>, vector<2x128xf32>
    %c0_57 = arith.constant 0 : index
    %c0_58 = arith.constant 0 : index
    %105 = vector.load %arg15[%c0_57, %c0_58] : memref<1x128xf32, #tpu.memory_space<vmem>>, vector<1x128xf32>
    %106 = vector.broadcast %105 : vector<1x128xf32> to vector<2x128xf32>
    %107 = arith.mulf %104, %106 : vector<2x128xf32>
    %cst_59 = arith.constant dense<0.000000e+00> : vector<2xf32>
    %108 = vector.multi_reduction <add>, %107, %cst_59 [1] : vector<2x128xf32> to vector<2xf32>
    %109 = vector.shape_cast %108 : vector<2xf32> to vector<2x1xf32>
    %c0_60 = arith.constant 0 : index
    %c0_61 = arith.constant 0 : index
    %110 = vector.load %arg16[%c0_60, %c0_61] : memref<1x1xf32, #tpu.memory_space<vmem>>, vector<1x1xf32>
    %111 = vector.broadcast %110 : vector<1x1xf32> to vector<2x1xf32>
    %112 = arith.addf %109, %111 : vector<2x1xf32>
    %cst_62 = arith.constant 0.000000e+00 : f32
    %113 = vector.broadcast %cst_62 : f32 to vector<2x1xf32>
    %114 = arith.cmpf oge, %112, %113 : vector<2x1xf32>
    %cst_63 = arith.constant 0.00999999977 : f32
    %115 = vector.broadcast %cst_63 : f32 to vector<2x1xf32>
    %116 = arith.mulf %115, %112 : vector<2x1xf32>
    %117 = arith.select %114, %112, %116 : vector<2x1xi1>, vector<2x1xf32>
    %cst_64 = arith.constant 0.00999999977 : f32
    %cst_65 = arith.constant 1.000000e+02 : f32
    %118 = vector.broadcast %cst_64 : f32 to vector<2x1xf32>
    %119 = arith.maximumf %118, %117 : vector<2x1xf32>
    %120 = vector.broadcast %cst_65 : f32 to vector<2x1xf32>
    %121 = arith.minimumf %120, %119 : vector<2x1xf32>
    %c0_66 = arith.constant 0 : index
    %c0_67 = arith.constant 0 : index
    %122 = vector.load %arg17[%c0_66, %c0_67] : memref<2x1xf32, #tpu.memory_space<vmem>>, vector<2x1xf32>
    tpu.vector_store %arg17[%c0_66, %c0_67], %121 {strides = array<i32>} : memref<2x1xf32, #tpu.memory_space<vmem>>, vector<2x1xf32>,
    return
  }
  func.func @transform_0(%arg0: i32) -> (i32, i32, i32) {
    %c0_i32 = arith.constant 0 : i32
    %c0_i32_0 = arith.constant 0 : i32
    %c0_i32_1 = arith.constant 0 : i32
    return %arg0, %c0_i32, %c0_i32_0 : i32, i32, i32
  }
  func.func @transform_1(%arg0: i32) -> (i32, i32, i32) {
    %c0_i32 = arith.constant 0 : i32
    %c0_i32_0 = arith.constant 0 : i32
    %c0_i32_1 = arith.constant 0 : i32
    return %arg0, %c0_i32, %c0_i32_0 : i32, i32, i32
  }
  func.func @transform_2(%arg0: i32) -> (i32, i32) {
    %c0_i32 = arith.constant 0 : i32
    %c0_i32_0 = arith.constant 0 : i32
    %c0_i32_1 = arith.constant 0 : i32
    return %c0_i32, %c0_i32_0 : i32, i32
  }
  func.func @transform_3(%arg0: i32) -> (i32, i32) {
    %c0_i32 = arith.constant 0 : i32
    %c0_i32_0 = arith.constant 0 : i32
    %c0_i32_1 = arith.constant 0 : i32
    return %c0_i32, %c0_i32_0 : i32, i32
  }
  func.func @transform_4(%arg0: i32) -> (i32, i32) {
    %c0_i32 = arith.constant 0 : i32
    %c0_i32_0 = arith.constant 0 : i32
    %c0_i32_1 = arith.constant 0 : i32
    return %c0_i32, %c0_i32_0 : i32, i32
  }
  func.func @transform_5(%arg0: i32) -> (i32, i32) {
    %c0_i32 = arith.constant 0 : i32
    %c0_i32_0 = arith.constant 0 : i32
    %c0_i32_1 = arith.constant 0 : i32
    return %c0_i32, %c0_i32_0 : i32, i32
  }
  func.func @transform_6(%arg0: i32) -> (i32, i32) {
    %c0_i32 = arith.constant 0 : i32
    %c0_i32_0 = arith.constant 0 : i32
    %c0_i32_1 = arith.constant 0 : i32
    return %c0_i32, %c0_i32_0 : i32, i32
  }
  func.func @transform_7(%arg0: i32) -> (i32, i32) {
    %c0_i32 = arith.constant 0 : i32
    %c0_i32_0 = arith.constant 0 : i32
    %c0_i32_1 = arith.constant 0 : i32
    return %c0_i32, %c0_i32_0 : i32, i32
  }
  func.func @transform_8(%arg0: i32) -> (i32, i32) {
    %c0_i32 = arith.constant 0 : i32
    %c0_i32_0 = arith.constant 0 : i32
    %c0_i32_1 = arith.constant 0 : i32
    return %c0_i32, %c0_i32_0 : i32, i32
  }
  func.func @transform_9(%arg0: i32) -> (i32, i32) {
    %c0_i32 = arith.constant 0 : i32
    %c0_i32_0 = arith.constant 0 : i32
    %c0_i32_1 = arith.constant 0 : i32
    return %c0_i32, %c0_i32_0 : i32, i32
  }
  func.func @transform_10(%arg0: i32) -> (i32, i32) {
    %c0_i32 = arith.constant 0 : i32
    %c0_i32_0 = arith.constant 0 : i32
    %c0_i32_1 = arith.constant 0 : i32
    return %c0_i32, %c0_i32_0 : i32, i32
  }
  func.func @transform_11(%arg0: i32) -> (i32, i32) {
    %c0_i32 = arith.constant 0 : i32
    %c0_i32_0 = arith.constant 0 : i32
    %c0_i32_1 = arith.constant 0 : i32
    return %c0_i32, %c0_i32_0 : i32, i32
  }
  func.func @transform_12(%arg0: i32) -> (i32, i32) {
    %c0_i32 = arith.constant 0 : i32
    %c0_i32_0 = arith.constant 0 : i32
    %c0_i32_1 = arith.constant 0 : i32
    return %c0_i32, %c0_i32_0 : i32, i32
  }
  func.func @transform_13(%arg0: i32) -> (i32, i32) {
    %c0_i32 = arith.constant 0 : i32
    %c0_i32_0 = arith.constant 0 : i32
    %c0_i32_1 = arith.constant 0 : i32
    return %c0_i32, %c0_i32_0 : i32, i32
  }
  func.func @transform_14(%arg0: i32) -> (i32, i32) {
    %c0_i32 = arith.constant 0 : i32
    %c0_i32_0 = arith.constant 0 : i32
    %c0_i32_1 = arith.constant 0 : i32
    return %c0_i32, %c0_i32_0 : i32, i32
  }
  func.func @transform_15(%arg0: i32) -> (i32, i32) {
    %c0_i32 = arith.constant 0 : i32
    %c0_i32_0 = arith.constant 0 : i32
    %c0_i32_1 = arith.constant 0 : i32
    return %c0_i32, %c0_i32_0 : i32, i32
  }
  func.func @transform_16(%arg0: i32) -> (i32, i32) {
    %c0_i32 = arith.constant 0 : i32
    %c0_i32_0 = arith.constant 0 : i32
    return %arg0, %c0_i32 : i32, i32
  }
  func.func @transform_17(%arg0: i32) -> (i32, i32) {
    %c0_i32 = arith.constant 0 : i32
    %c0_i32_0 = arith.constant 0 : i32
    return %arg0, %c0_i32 : i32, i32
  }
}

</mosaic_0001>

<bundles_post_ra>
// kernel: temperature_net_forward.1
= control target key start
LH: loop header
LB: loop body
LE: loop exit
PB: predicated region body
PF: predicated region fallthrough
CT: control target
= control target key end

     0   :  { %s1120_s0 = inlined_call_operand.hbm [shape: f32[2,16,512], index: 0, kind: input, shape index: {}]   ;;  %s1121_s1 = inlined_call_operand.hbm [shape: f32[2,16,512], index: 1, kind: input, shape index: {}]   ;;  %s1122_s2 = inlined_call_operand.hbm [shape: f32[512,128], index: 2, kind: input, shape index: {}]   ;;  %s1123_s3 = inlined_call_operand.vmem [shape: f32[1,128], index: 3, kind: input, shape index: {}]   ;;  %s1124_s4 = inlined_call_operand.vmem [shape: f32[1,128], index: 4, kind: input, shape index: {}]   ;;  %s1125_s5 = inlined_call_operand.vmem [shape: f32[1,128], index: 5, kind: input, shape index: {}]   ;;  %s1126_s6 = inlined_call_operand.hbm [shape: f32[128,128], index: 6, kind: input, shape index: {}]   ;;  %s1127_s7 = inlined_call_operand.vmem [shape: f32[1,128], index: 7, kind: input, shape index: {}]   ;;  %s1128_s8 = inlined_call_operand.vmem [shape: f32[1,128], index: 8, kind: input, shape index: {}]   ;;  %s1129_s9 = inlined_call_operand.vmem [shape: f32[1,128], index: 9, kind: input, shape index: {}]   ;;  %s1130_s10 = inlined_call_operand.hbm [shape: f32[128,128], index: 10, kind: input, shape index: {}]   ;;  %s1131_s11 = inlined_call_operand.vmem [shape: f32[1,128], index: 11, kind: input, shape index: {}]   ;;  %s1132_s12 = inlined_call_operand.vmem [shape: f32[1,128], index: 12, kind: input, shape index: {}]   ;;  %s1133_s13 = inlined_call_operand.vmem [shape: f32[1,128], index: 13, kind: input, shape index: {}]   ;;  %s1134_s14 = inlined_call_operand.vmem [shape: f32[1,128], index: 14, kind: input, shape index: {}]   ;;  %s1135_s15 = inlined_call_operand.<no memory space> [shape: f32[1,1], index: 15, kind: input, shape index: {}]   ;;  %s1136_s16 = inlined_call_operand.vmem [shape: f32[2,1], index: 16, kind: output, shape index: {0}]   ;;  %s1137_s17 = inlined_call_operand.hbm [shape: f32[2,512], index: 17, kind: output, shape index: {1}]  }
   0x1   :  { %1138 = sst [smem:[#allocation17_spill]] %s1120_s0  ;;  %v23_v0 = vstv %s1135_s15 }
   0x2   :  { %1139 = sst [smem:[#allocation18_spill]] %s1121_s1  ;;  %24 = vst [vmem:[#allocation2] sm:$0x1] %v23_v0 }
   0x3   :  { %1140 = sst [smem:[#allocation19_spill]] %s1136_s16 }
   0x4   :  { %1141 = sst [smem:[#allocation20_spill]] %s1137_s17 }
   0x5   :  { %25 = vsyncpa [#allocation4], 0 }
   0x6   :  { %26 = vsyncpa [#allocation7], 0 }
   0x7   :  { %27 = vsyncpa [#allocation10], 0 }
   0x8   :  { %28 = vsyncpa [#allocation5], 0  ;;  %s1142_s28 = sld [smem:[#allocation18_spill]]  ;;  %s915_s0 = smov [#allocation6]  }
   0x9   :  { %s48_s30 = sshll.u32 %s915_s0, 4  ;;  %s916_s18 = smov 512   ;;  %s49_s30 = int_to_ptr.vmem [resolvable:$true] %s48_s30 }
   0xa   :  { %s917_s19 = smov 32   ;;  %s78_s15 = sshll.u32 %s1126_s6, 4  ;;  %s79_s15 = int_to_ptr.hbm [resolvable:$true] %s78_s15 }
   0xb   :  { %s918_s21 = smov [#allocation9]   ;;  %s1143_s25 = sld [smem:[#allocation17_spill]] }
   0xc   :  { %s80_s22 = sshll.u32 %s918_s21, 4  ;;  %s919_s26 = smov 128   ;;  %s81_s22 = int_to_ptr.vmem [resolvable:$true] %s80_s22 }
   0xd   :  { %s920_s27 = smov 8   ;;  %s922_s6 = smov [#allocation8]  }
   0xe   :  { %s46_s29 = sshll.u32 %s1142_s28, 4  ;;  %s61_s1 = sshll.u32 %s922_s6, 4  ;;  %s47_s29 = int_to_ptr.hbm [resolvable:$true] %s46_s29  ;;  %s62_s1 = int_to_ptr.vmem [resolvable:$true] %s61_s1 }
   0xf   :  { %54 = dma.hbm_to_vmem [thread:$0]  %s47_s29, 2048, %s49_s30, [#allocation7], %s916_s18, %s916_s18, %s917_s19  }
  0x10   :  { %86 = dma.hbm_to_vmem [thread:$0]  %s79_s15, 2048, %s81_s22, [#allocation10], %s919_s26, %s919_s26, %s920_s27  }
  0x11   :  { %s33_s16 = sshll.u32 %s1143_s25, 4  ;;  %s59_s29 = sshll.u32 %s1122_s2, 4  ;;  %s34_s16 = int_to_ptr.hbm [resolvable:$true] %s33_s16  ;;  %s60_s29 = int_to_ptr.hbm [resolvable:$true] %s59_s29 }
  0x12   :  { %s921_s30 = smov [#allocation3]   ;;  %s97_s23 = sshll.u32 %s1130_s10, 4  ;;  %s98_s23 = int_to_ptr.hbm [resolvable:$true] %s97_s23 }
  0x13   :  { %s35_s17 = sshll.u32 %s921_s30, 4  ;;  %s923_s24 = smov [#allocation11]   ;;  %s36_s17 = int_to_ptr.vmem [resolvable:$true] %s35_s17 }
  0x14   :  { %41 = dma.hbm_to_vmem [thread:$0]  %s34_s16, 2048, %s36_s17, [#allocation4], %s916_s18, %s916_s18, %s917_s19  }
  0x15   :  { %67 = dma.hbm_to_vmem [thread:$0]  %s60_s29, 8192, %s62_s1, [#allocation7], %s919_s26, %s919_s26, %s920_s27  }
  0x16   :  { %s99_s15 = sshll.u32 %s923_s24, 4  ;;  %s100_s15 = int_to_ptr.vmem [resolvable:$true] %s99_s15 }
  0x17   :  { %105 = dma.hbm_to_vmem [thread:$0]  %s98_s23, 2048, %s100_s15, [#allocation10], %s919_s26, %s919_s26, %s920_s27  }
  0x18   :  { %907 = dma.done.wait [#allocation4], 2048  }
  0x19   :  { %908 = vsyncadd [#allocation4], 4294965248 }
  0x1a   :  { %909 = dma.done.wait [#allocation7], 10240  }
  0x1b   :  { %910 = vsyncadd [#allocation7], 4294957056 }
  0x1c   :  { %911 = dma.done.wait [#allocation10], 4096  }
  0x1d   :  { %912 = vsyncadd [#allocation10], 4294963200  ;;  %v389_v1 = vld [vmem:[#allocation8 + $0x178] sm:$0xff]  ;;  %v388_v3 = vld [vmem:[#allocation8 + $0x170] sm:$0xff]  ;;  %vm332_vm0 = vcmask 1041409   ;;  %vm320_vm1 = vcmask 1045508  }
  0x1e   :  { %v357_v2 = vld [vmem:[#allocation8 + $0x78] sm:$0xff]  ;;  %458 = vmatpush.msra.mxu2 %v389_v1  ;;  %v356_v5 = vld [vmem:[#allocation8 + $0x70] sm:$0xff]  ;;  %v387_v7 = vld [vmem:[#allocation8 + $0x168] sm:$0xff]  ;;  %vm318_vm2 = vcmask 1041408   ;;  %s1145_s23 = sld [smem:[#allocation19_spill]] }
  0x1f   :  { %418 = vmatpush.msra.mxu0 %v357_v2  ;;  %v405_v4 = vld [vmem:[#allocation8 + $0x1f8] sm:$0xff]  ;;  %v404_v8 = vld [vmem:[#allocation8 + $0x1f0] sm:$0xff]  ;;  %v355_v9 = vld [vmem:[#allocation8 + $0x68] sm:$0xff] }
  0x20   :  { %v373_v6 = vld [vmem:[#allocation8 + $0xf8] sm:$0xff]  ;;  %478 = vmatpush.msra.mxu3 %v405_v4  ;;  %459 = vmatpush.msra.mxu2 %v388_v3  ;;  %v372_v10 = vld [vmem:[#allocation8 + $0xf0] sm:$0xff]  ;;  %v403_v11 = vld [vmem:[#allocation8 + $0x1e8] sm:$0xff] }
  0x21   :  { %438 = vmatpush.msra.mxu1 %v373_v6  ;;  %419 = vmatpush.msra.mxu0 %v356_v5  ;;  %v386_v12 = vld [vmem:[#allocation8 + $0x160] sm:$0xff]  ;;  %v371_v14 = vld [vmem:[#allocation8 + $0xe8] sm:$0xff]  ;;  %v385_v17 = vld [vmem:[#allocation8 + $0x158] sm:$0xff] }
  0x22   :  { %479 = vmatpush.msra.mxu3 %v404_v8  ;;  %v354_v13 = vld [vmem:[#allocation8 + $0x60] sm:$0xff]  ;;  %460 = vmatpush.msra.mxu2 %v387_v7  ;;  %v353_v18 = vld [vmem:[#allocation8 + $0x58] sm:$0xff]  ;;  %v384_v21 = vld [vmem:[#allocation8 + $0x150] sm:$0xff] }
  0x23   :  { %439 = vmatpush.msra.mxu1 %v372_v10  ;;  %420 = vmatpush.msra.mxu0 %v355_v9  ;;  %v402_v15 = vld [vmem:[#allocation8 + $0x1e0] sm:$0xff]  ;;  %v401_v19 = vld [vmem:[#allocation8 + $0x1d8] sm:$0xff]  ;;  %v352_v22 = vld [vmem:[#allocation8 + $0x50] sm:$0xff] }
  0x24   :  { %v370_v16 = vld [vmem:[#allocation8 + $0xe0] sm:$0xff]  ;;  %480 = vmatpush.msra.mxu3 %v403_v11  ;;  %461 = vmatpush.msra.mxu2 %v386_v12  ;;  %v369_v20 = vld [vmem:[#allocation8 + $0xd8] sm:$0xff]  ;;  %v400_v23 = vld [vmem:[#allocation8 + $0x1d0] sm:$0xff] }
  0x25   :  { %440 = vmatpush.msra.mxu1 %v371_v14  ;;  %421 = vmatpush.msra.mxu0 %v354_v13  ;;  %v368_v24 = vld [vmem:[#allocation8 + $0xd0] sm:$0xff]  ;;  %v383_v25 = vld [vmem:[#allocation8 + $0x148] sm:$0xff]  ;;  %v382_v29 = vld [vmem:[#allocation8 + $0x140] sm:$0xff] }
  0x26   :  { %481 = vmatpush.msra.mxu3 %v402_v15  ;;  %462 = vmatpush.msra.mxu2 %v385_v17  ;;  %v351_v26 = vld [vmem:[#allocation8 + $0x48] sm:$0xff]  ;;  %v350_v30 = vld [vmem:[#allocation8 + $0x40] sm:$0xff]  ;;  %v381_v33 = vld [vmem:[#allocation8 + $0x138] sm:$0xff] }
  0x27   :  { %441 = vmatpush.msra.mxu1 %v370_v16  ;;  %422 = vmatpush.msra.mxu0 %v353_v18  ;;  %v399_v27 = vld [vmem:[#allocation8 + $0x1c8] sm:$0xff]  ;;  %v398_v31 = vld [vmem:[#allocation8 + $0x1c0] sm:$0xff]  ;;  %v349_v34 = vld [vmem:[#allocation8 + $0x38] sm:$0xff] }
  0x28   :  { %482 = vmatpush.msra.mxu3 %v401_v19  ;;  %463 = vmatpush.msra.mxu2 %v384_v21  ;;  %v367_v28 = vld [vmem:[#allocation8 + $0xc8] sm:$0xff]  ;;  %v366_v32 = vld [vmem:[#allocation8 + $0xc0] sm:$0xff]  ;;  %v397_v35 = vld [vmem:[#allocation8 + $0x1b8] sm:$0xff] }
  0x29   :  { %442 = vmatpush.msra.mxu1 %v369_v20  ;;  %423 = vmatpush.msra.mxu0 %v352_v22  ;;  %v365_v36 = vld [vmem:[#allocation8 + $0xb8] sm:$0xff]  ;;  %v380_v37 = vld [vmem:[#allocation8 + $0x130] sm:$0xff]  ;;  %v379_v39 = vld [vmem:[#allocation8 + $0x128] sm:$0xff] }
  0x2a   :  { %483 = vmatpush.msra.mxu3 %v400_v23  ;;  %464 = vmatpush.msra.mxu2 %v383_v25  ;;  %v348_v38 = vld [vmem:[#allocation8 + $0x30] sm:$0xff]  ;;  %v347_v41 = vld [vmem:[#allocation8 + $0x28] sm:$0xff]  ;;  %v378_v43 = vld [vmem:[#allocation8 + $0x120] sm:$0xff] }
  0x2b   :  { %443 = vmatpush.msra.mxu1 %v368_v24  ;;  %424 = vmatpush.msra.mxu0 %v351_v26  ;;  %v396_v40 = vld [vmem:[#allocation8 + $0x1b0] sm:$0xff]  ;;  %v395_v44 = vld [vmem:[#allocation8 + $0x1a8] sm:$0xff]  ;;  %v346_v45 = vld [vmem:[#allocation8 + $0x20] sm:$0xff] }
  0x2c   :  { %484 = vmatpush.msra.mxu3 %v399_v27  ;;  %465 = vmatpush.msra.mxu2 %v382_v29  ;;  %v364_v42 = vld [vmem:[#allocation8 + $0xb0] sm:$0xff]  ;;  %v363_v46 = vld [vmem:[#allocation8 + $0xa8] sm:$0xff]  ;;  %v394_v47 = vld [vmem:[#allocation8 + $0x1a0] sm:$0xff] }
  0x2d   :  { %444 = vmatpush.msra.mxu1 %v367_v28  ;;  %425 = vmatpush.msra.mxu0 %v350_v30  ;;  %v362_v48 = vld [vmem:[#allocation8 + $0xa0] sm:$0xff]  ;;  %v377_v49 = vld [vmem:[#allocation8 + $0x118] sm:$0xff]  ;;  %v138_v51 = vld [vmem:[#allocation3 + $0x10] sm:$0xff] }
  0x2e   :  { %485 = vmatpush.msra.mxu3 %v398_v31  ;;  %466 = vmatpush.msra.mxu2 %v381_v33  ;;  %v345_v50 = vld [vmem:[#allocation8 + $0x18] sm:$0xff]  ;;  %v142_v52 = vld [vmem:[#allocation3 + $0x30] sm:$0xff]  ;;  %v136_v6 = vld [vmem:[#allocation3] sm:$0xff] }
  0x2f   :  { %445 = vmatpush.msra.mxu1 %v366_v32  ;;  %426 = vmatpush.msra.mxu0 %v349_v34  ;;  %v146_v53 = vld [vmem:[#allocation3 + $0x50] sm:$0xff]  ;;  %v393_v54 = vld [vmem:[#allocation8 + $0x198] sm:$0xff]  ;;  %v182_v58 = vadd.f32 %v142_v52, %v138_v51  ;;  %v140_v9 = vld [vmem:[#allocation3 + $0x20] sm:$0xff] }
  0x30   :  { %486 = vmatpush.msra.mxu3 %v397_v35  ;;  %467 = vmatpush.msra.mxu2 %v380_v37  ;;  %v150_v55 = vld [vmem:[#allocation3 + $0x70] sm:$0xff]  ;;  %v361_v61 = vld [vmem:[#allocation8 + $0x98] sm:$0xff]  ;;  %v144_v10 = vld [vmem:[#allocation3 + $0x40] sm:$0xff]  ;;  %v168_v17 = vadd.f32 %v140_v9, %v136_v6 }
  0x31   :  { %446 = vmatpush.msra.mxu1 %v365_v36  ;;  %427 = vmatpush.msra.mxu0 %v348_v38  ;;  %v154_v56 = vld [vmem:[#allocation6 + $0x10] sm:$0xff]  ;;  %v210_v0 = vadd.f32 %v150_v55, %v146_v53  ;;  %v183_v4 = vrot.slane %v182_v58, 4  ;;  %v148_v11 = vld [vmem:[#allocation3 + $0x60] sm:$0xff]  ;;  %v375_v19 = vld [vmem:[#allocation8 + $0x108] sm:$0xff] }
  0x32   :  { %487 = vmatpush.msra.mxu3 %v396_v40  ;;  %468 = vmatpush.msra.mxu2 %v379_v39  ;;  %v158_v57 = vld [vmem:[#allocation6 + $0x30] sm:$0xff]  ;;  %v152_v14 = vld [vmem:[#allocation6] sm:$0xff]  ;;  %v196_v18 = vadd.f32 %v148_v11, %v144_v10  ;;  %v343_v20 = vld [vmem:[#allocation8 + $0x8] sm:$0xff]  ;;  %v169_v29 = vrot.slane %v168_v17, 4 }
  0x33   :  { %447 = vmatpush.msra.mxu1 %v364_v42  ;;  %428 = vmatpush.msra.mxu0 %v347_v41  ;;  %v376_v59 = vld [vmem:[#allocation8 + $0x110] sm:$0xff]  ;;  %v238_v1 = vadd.f32 %v158_v57, %v154_v56  ;;  %v211_v7 = vrot.slane %v210_v0, 4  ;;  %v184_v12 = vadd.f32 %v183_v4, %v182_v58  ;;  %v156_v15 = vld [vmem:[#allocation6 + $0x20] sm:$0xff]  ;;  %v391_v25 = vld [vmem:[#allocation8 + $0x188] sm:$0xff] }
  0x34   :  { %488 = vmatpush.msra.mxu3 %v395_v44  ;;  %v344_v60 = vld [vmem:[#allocation8 + $0x10] sm:$0xff]  ;;  %469 = vmatpush.msra.mxu2 %v378_v43  ;;  %v160_v16 = vld [vmem:[#allocation6 + $0x40] sm:$0xff]  ;;  %v224_v24 = vadd.f32 %v156_v15, %v152_v14  ;;  %v359_v28 = vld [vmem:[#allocation8 + $0x88] sm:$0xff]  ;;  %v197_v30 = vrot.slane %v196_v18, 4  ;;  %v170_v40 = vadd.f32 %v169_v29, %v168_v17 }
  0x35   :  { %448 = vmatpush.msra.mxu1 %v363_v46  ;;  %v162_v62 = vld [vmem:[#allocation6 + $0x50] sm:$0xff]  ;;  %429 = vmatpush.msra.mxu0 %v346_v45  ;;  %v239_v8 = vrot.slane %v238_v1, 4  ;;  %v212_v21 = vadd.f32 %v211_v7, %v210_v0  ;;  %v164_v23 = vld [vmem:[#allocation6 + $0x60] sm:$0xff]  ;;  %v185_v26 = vrot.slane %v184_v12, 2  ;;  %v139_v51 = vld [vmem:[#allocation3 + $0x18] sm:$0xff] }
  0x36   :  { %v166_v63 = vld [vmem:[#allocation6 + $0x70] sm:$0xff]  ;;  %489 = vmatpush.msra.mxu3 %v394_v47  ;;  %470 = vmatpush.msra.mxu2 %v377_v49  ;;  %v374_v31 = vld [vmem:[#allocation8 + $0x100] sm:$0xff]  ;;  %v225_v35 = vrot.slane %v224_v24, 4  ;;  %v252_v36 = vadd.f32 %v164_v23, %v160_v16  ;;  %v198_v41 = vadd.f32 %v197_v30, %v196_v18  ;;  %v171_v49 = vrot.slane %v170_v40, 2  ;;  %v143_v52 = vld [vmem:[#allocation3 + $0x38] sm:$0xff] }
  0x37   :  { %v392_v2 = vld [vmem:[#allocation8 + $0x190] sm:$0xff]  ;;  %v266_v5 = vadd.f32 %v166_v63, %v162_v62  ;;  %449 = vmatpush.msra.mxu1 %v362_v48  ;;  %430 = vmatpush.msra.mxu0 %v345_v50  ;;  %v240_v22 = vadd.f32 %v239_v8, %v238_v1  ;;  %v213_v32 = vrot.slane %v212_v21, 2  ;;  %v342_v34 = vld [vmem:[#allocation8] sm:$0xff]  ;;  %v186_v37 = vadd.f32 %v185_v26, %v184_v12  ;;  %v147_v57 = vld [vmem:[#allocation3 + $0x58] sm:$0xff] }
  0x38   :  { %v360_v3 = vld [vmem:[#allocation8 + $0x90] sm:$0xff]  ;;  %490 = vmatpush.msra.mxu3 %v393_v54  ;;  %471 = vmatpush.msra.mxu2 %v376_v59  ;;  %v390_v39 = vld [vmem:[#allocation8 + $0x180] sm:$0xff]  ;;  %v226_v45 = vadd.f32 %v225_v35, %v224_v24  ;;  %v253_v46 = vrot.slane %v252_v36, 4  ;;  %v199_v50 = vrot.slane %v198_v41, 2  ;;  %v151_v62 = vld [vmem:[#allocation3 + $0x78] sm:$0xff]  ;;  %v189_v9 = vadd.f32 %v143_v52, %v139_v51 }
  0x39   :  { %v267_v13 = vrot.slane %v266_v5, 4  ;;  %450 = vmatpush.msra.mxu1 %v361_v61  ;;  %431 = vmatpush.msra.mxu0 %v344_v60  ;;  %v241_v33 = vrot.slane %v240_v22, 2  ;;  %v358_v42 = vld [vmem:[#allocation8 + $0x80] sm:$0xff]  ;;  %v214_v43 = vadd.f32 %v213_v32, %v212_v21  ;;  %v187_v47 = vrot.slane %v186_v37, 1  ;;  %v159_v4 = vld [vmem:[#allocation6 + $0x38] sm:$0xff] }
  0x3a   :  { %491 = vmatpush.msra.mxu3 %v392_v2  ;;  %472 = vmatpush.msra.mxu2 %v375_v19  ;;  %v227_v55 = vrot.slane %v226_v45, 2  ;;  %v254_v56 = vadd.f32 %v253_v46, %v252_v36  ;;  %v172_v60 = vadd.f32 %v171_v49, %v170_v40  ;;  %v200_v61 = vadd.f32 %v199_v50, %v198_v41  ;;  %v153_v49 = vld [vmem:[#allocation6 + $0x8] sm:$0xff] }
  0x3b   :  { %v268_v27 = vadd.f32 %v267_v13, %v266_v5  ;;  %451 = vmatpush.msra.mxu1 %v360_v3  ;;  %432 = vmatpush.msra.mxu0 %v343_v20  ;;  %v242_v44 = vadd.f32 %v241_v33, %v240_v22  ;;  %v215_v53 = vrot.slane %v214_v43, 1  ;;  %v188_v58 = vadd.f32 %v187_v47, %v186_v37  ;;  %v155_v3 = vld [vmem:[#allocation6 + $0x18] sm:$0xff]  ;;  %v157_v50 = vld [vmem:[#allocation6 + $0x28] sm:$0xff] }
  0x3c   :  { %492 = vmatpush.msra.mxu3 %v391_v25  ;;  %473 = vmatpush.msra.mxu2 %v374_v31  ;;  %v228_v1 = vadd.f32 %v227_v55, %v226_v45  ;;  %v255_v2 = vrot.slane %v254_v56, 2  ;;  %v163_v5 = vld [vmem:[#allocation6 + $0x58] sm:$0xff]  ;;  %v173_v7 = vrot.slane %v172_v60, 1  ;;  %v201_v8 = vrot.slane %v200_v61, 1 }
  0x3d   :  { %v269_v38 = vrot.slane %v268_v27, 2  ;;  %452 = vmatpush.msra.mxu1 %v359_v28  ;;  %433 = vmatpush.msra.mxu0 %v342_v34  ;;  %v243_v54 = vrot.slane %v242_v44, 1  ;;  %v216_v63 = vadd.f32 %v215_v53, %v214_v43  ;;  %v167_v13 = vld [vmem:[#allocation6 + $0x78] sm:$0xff]  ;;  %v217_v14 = vadd.f32 %v151_v62, %v147_v57  ;;  %v145_v43 = vld [vmem:[#allocation3 + $0x48] sm:$0xff] }
  0x3e   :  { %493 = vmatpush.msra.mxu3 %v390_v39  ;;  %v229_v11 = vrot.slane %v228_v1, 1  ;;  %v256_v12 = vadd.f32 %v255_v2, %v254_v56  ;;  %v174_v16 = vadd.f32 %v173_v7, %v172_v60  ;;  %v202_v17 = vadd.f32 %v201_v8, %v200_v61  ;;  %v141_v39 = vld [vmem:[#allocation3 + $0x28] sm:$0xff] }
  0x3f   :  { %v270_v48 = vadd.f32 %v269_v38, %v268_v27  ;;  %453 = vmatpush.msra.mxu1 %v358_v42  ;;  %v244_v0 = vadd.f32 %v243_v54, %v242_v44  ;;  %v190_v18 = vrot.slane %v189_v9, 4  ;;  %v218_v22 = vrot.slane %v217_v14, 4  ;;  %v137_v38 = vld [vmem:[#allocation3 + $0x8] sm:$0xff] }
  0x40   :  { %v230_v20 = vadd.f32 %v229_v11, %v228_v1  ;;  %v257_v21 = vrot.slane %v256_v12, 1  ;;  %v245_v25 = vadd.f32 %v159_v4, %v155_v3  ;;  %v273_v26 = vadd.f32 %v167_v13, %v163_v5  ;;  %v149_v44 = vld [vmem:[#allocation3 + $0x68] sm:$0xff] }
  0x41   :  { %v271_v59 = vrot.slane %v270_v48, 1  ;;  %v282_v10 = vsub.f32 %v188_v58, %v244_v0  ;;  %v191_v24 = vadd.f32 %v190_v18, %v189_v9  ;;  %v219_v30 = vadd.f32 %v218_v22, %v217_v14  ;;  %v161_v57 = vld [vmem:[#allocation6 + $0x48] sm:$0xff] }
  0x42   :  { %v258_v28 = vadd.f32 %v257_v21, %v256_v12  ;;  %v280_v29 = vsub.f32 %v174_v16, %v230_v20  ;;  %v246_v33 = vrot.slane %v245_v25, 4  ;;  %v274_v34 = vrot.slane %v273_v26, 4  ;;  %v165_v58 = vld [vmem:[#allocation6 + $0x68] sm:$0xff] }
  0x43   :  { %v272_v6 = vadd.f32 %v271_v59, %v270_v48  ;;  %v290_v19 = vand.u32 2147483647, %v282_v10  ;;  %v192_v32 = vrot.slane %v191_v24, 2  ;;  %v220_v37 = vrot.slane %v219_v30, 2 }
  0x44   :  { %v284_v35 = vsub.f32 %v202_v17, %v258_v28  ;;  %v288_v36 = vand.u32 2147483647, %v280_v29  ;;  %v247_v42 = vadd.f32 %v246_v33, %v245_v25  ;;  %v275_v48 = vadd.f32 %v274_v34, %v273_v26 }
  0x45   :  { %v286_v15 = vsub.f32 %v216_v63, %v272_v6  ;;  %v1034_v27 = vmul.f32 0.0625, %v290_v19  ;;  %v193_v41 = vadd.f32 %v192_v32, %v191_v24  ;;  %v221_v47 = vadd.f32 %v220_v37, %v219_v30 }
  0x46   :  { %v292_v45 = vand.u32 2147483647, %v284_v35  ;;  %v1041_v46 = vmul.f32 0.0625, %v288_v36  ;;  %v248_v52 = vrot.slane %v247_v42, 2  ;;  %v175_v53 = vadd.f32 %v141_v39, %v137_v38 }
  0x47   :  { %v294_v23 = vand.u32 2147483647, %v286_v15  ;;  %v194_v51 = vrot.slane %v193_v41, 1  ;;  %v222_v55 = vrot.slane %v221_v47, 1  ;;  %v276_v56 = vrot.slane %v275_v48, 2 }
  0x48   :  { %v1043_v54 = vmul.f32 0.0625, %v292_v45  ;;  %v203_v59 = vadd.f32 %v149_v44, %v145_v43  ;;  %v249_v60 = vadd.f32 %v248_v52, %v247_v42  ;;  %v176_v61 = vrot.slane %v175_v53, 4 }
  0x49   :  { %v1036_v31 = vmul.f32 0.0625, %v294_v23  ;;  %v231_v62 = vadd.f32 %v157_v50, %v153_v49  ;;  %v195_v0 = vadd.f32 %v194_v51, %v193_v41  ;;  %v277_v1 = vadd.f32 %v276_v56, %v275_v48 }
  0x4a   :  { %v410_v63 = vsel %vm332_vm0, %v1043_v54, %v1041_v46  ;;  %v204_v2 = vrot.slane %v203_v59, 4  ;;  %v250_v3 = vrot.slane %v249_v60, 1  ;;  %v177_v4 = vadd.f32 %v176_v61, %v175_v53 }
  0x4b   :  { %v412_v40 = vsel %vm332_vm0, %v1036_v31, %v1034_v27  ;;  %434 = vmatmul.f32.vlgmr.msra.gmra.mxu0 %v410_v63  ;;  %v232_v5 = vrot.slane %v231_v62, 4  ;;  %v259_v6 = vadd.f32 %v165_v58, %v161_v57  ;;  %v223_v7 = vadd.f32 %v222_v55, %v221_v47  ;;  %v744_v57 = vld [vmem:[%s1123_s3] ss:$0 sm:$0xff] }
  0x4c   :  { %474 = vmatmul.f32.vlgmr.msra.gmra.mxu2 %v412_v40  ;;  %v278_v8 = vrot.slane %v277_v1, 1  ;;  %v205_v9 = vadd.f32 %v204_v2, %v203_v59  ;;  %v251_v10 = vadd.f32 %v250_v3, %v249_v60  ;;  %v178_v11 = vrot.slane %v177_v4, 2 }
  0x4d   :  { %v233_v12 = vadd.f32 %v232_v5, %v231_v62  ;;  %v260_v13 = vrot.slane %v259_v6, 4  ;;  %v313_v26 = vrot.slane %v1034_v27, 4  ;;  %v316_v35 = vrot.slane %v1036_v31, 4 }
  0x4e   :  { %v279_v14 = vadd.f32 %v278_v8, %v277_v1  ;;  %v206_v15 = vrot.slane %v205_v9, 2  ;;  %v283_v16 = vsub.f32 %v195_v0, %v251_v10  ;;  %v179_v17 = vadd.f32 %v178_v11, %v177_v4 }
  0x4f   :  { %v234_v18 = vrot.slane %v233_v12, 2  ;;  %v261_v19 = vadd.f32 %v260_v13, %v259_v6  ;;  %v924_v2 = vmov 128.0   ;;  %v555_v13 = vld [vmem:[#allocation9 + $0x78] sm:$0xff] }
  0x50   :  { %v287_v20 = vsub.f32 %v223_v7, %v279_v14  ;;  %v207_v21 = vadd.f32 %v206_v15, %v205_v9  ;;  %v291_v22 = vand.u32 2147483647, %v283_v16  ;;  %v180_v23 = vrot.slane %v179_v17, 1  ;;  %560 = vmatpush.msrb.mxu0 %v555_v13  ;;  %v554_v14 = vld [vmem:[#allocation9 + $0x70] sm:$0xff]  ;;  %v553_v15 = vld [vmem:[#allocation9 + $0x68] sm:$0xff]  ;;  %v552_v16 = vld [vmem:[#allocation9 + $0x60] sm:$0xff] }
  0x51   :  { %v235_v24 = vadd.f32 %v234_v18, %v233_v12  ;;  %v262_v25 = vrot.slane %v261_v19, 2  ;;  %755 = vrcp.f32 %v924_v2  ;;  %v550_v18 = vld [vmem:[#allocation9 + $0x50] sm:$0xff]  ;;  %v624_v2 = vld [vmem:[#allocation11 + $0x48] sm:$0xff] }
  0x52   :  { %v295_v28 = vand.u32 2147483647, %v287_v20  ;;  %v208_v29 = vrot.slane %v207_v21, 1  ;;  %v299_v30 = vmul.f32 0.0625, %v291_v22  ;;  %v181_v32 = vadd.f32 %v180_v23, %v179_v17  ;;  %561 = vmatpush.msrb.mxu0 %v554_v14  ;;  %v551_v17 = vld [vmem:[#allocation9 + $0x58] sm:$0xff]  ;;  %v548_v20 = vld [vmem:[#allocation9 + $0x40] sm:$0xff] }
  0x53   :  { %v236_v33 = vrot.slane %v235_v24, 1  ;;  %v263_v34 = vadd.f32 %v262_v25, %v261_v19  ;;  %v549_v19 = vld [vmem:[#allocation9 + $0x48] sm:$0xff]  ;;  %v546_v22 = vld [vmem:[#allocation9 + $0x30] sm:$0xff]  ;;  %v543_v25 = vld [vmem:[#allocation9 + $0x18] sm:$0xff] }
  0x54   :  { %v303_v36 = vmul.f32 0.0625, %v295_v28  ;;  %v314_v37 = vrot.slane %v299_v30, 2  ;;  %v209_v38 = vadd.f32 %v208_v29, %v207_v21  ;;  %562 = vmatpush.msrb.mxu0 %v553_v15  ;;  %v547_v21 = vld [vmem:[#allocation9 + $0x38] sm:$0xff]  ;;  %v545_v23 = vld [vmem:[#allocation9 + $0x28] sm:$0xff]  ;;  %v540_v29 = vld [vmem:[#allocation9] sm:$0xff] }
  0x55   :  { %v237_v39 = vadd.f32 %v236_v33, %v235_v24  ;;  %v264_v40 = vrot.slane %v263_v34, 1  ;;  %v544_v24 = vld [vmem:[#allocation9 + $0x20] sm:$0xff]  ;;  %v541_v28 = vld [vmem:[#allocation9 + $0x8] sm:$0xff] }
  0x56   :  { %v317_v41 = vrot.slane %v303_v36, 2  ;;  %v413_v42 = vsel %vm332_vm0, %v303_v36, %v299_v30  ;;  %v1051_v43 = vsel %vm320_vm1, %v313_v26, %v314_v37  ;;  %563 = vmatpush.msrb.mxu0 %v552_v16  ;;  %v542_v26 = vld [vmem:[#allocation9 + $0x10] sm:$0xff] }
  0x57   :  { %494 = vmatmul.f32.vlgmr.msra.gmra.mxu3 %v413_v42  ;;  %v265_v27 = vadd.f32 %v264_v40, %v263_v34  ;;  %v281_v44 = vsub.f32 %v181_v32, %v237_v39  ;;  %v756_v3 = vpop.eup %755  ;;  %v745_v40 = vld [vmem:[%s1124_s4] ss:$0 sm:$0xff] }
  0x58   :  { %v1053_v45 = vsel %vm320_vm1, %v316_v35, %v317_v41  ;;  %vm506_vm3 = vweird.f32 %v756_v3  ;;  %564 = vmatpush.msrb.mxu0 %v551_v17  ;;  %vm322_vm1 = vcmask 1043456  }
  0x59   :  { %v285_v47 = vsub.f32 %v209_v38, %v265_v27  ;;  %v289_v48 = vand.u32 2147483647, %v281_v44  ;;  %v746_v27 = vld [vmem:[%s1125_s5] ss:$0 sm:$0xff] }
  0x5a   :  { %565 = vmatpush.msrb.mxu0 %v550_v18 }
  0x5b   :  { %v293_v49 = vand.u32 2147483647, %v285_v47  ;;  %v297_v31 = vmul.f32 0.0625, %v289_v48 }
  0x5c   :  { %566 = vmatpush.msrb.mxu0 %v549_v19 }
  0x5d   :  { %v301_v50 = vmul.f32 0.0625, %v293_v49  ;;  %v312_v51 = vrot.slane %v297_v31, 6 }
  0x5e   :  { %567 = vmatpush.msrb.mxu0 %v548_v20 }
  0x5f   :  { %v315_v52 = vrot.slane %v301_v50, 6  ;;  %v1057_v53 = vsel %vm318_vm2, %v1041_v46, %v312_v51  ;;  %v411_v55 = vsel %vm332_vm0, %v301_v50, %v297_v31  ;;  %v747_v31 = vld [vmem:[%s1127_s7] ss:$0 sm:$0xff] }
  0x60   :  { %454 = vmatmul.f32.vlgmr.msra.gmra.mxu1 %v411_v55  ;;  %568 = vmatpush.msrb.mxu0 %v547_v21  ;;  %v748_v21 = vld [vmem:[%s1128_s8] ss:$0 sm:$0xff] }
  0x61   :  { %v1062_v56 = vsel %vm318_vm2, %v1043_v54, %v315_v52  ;;  %v502_v54 = vmul.f32 128.0, %v756_v3 }
  0x62   :  { %569 = vmatpush.msrb.mxu0 %v546_v22 }
  0x63   :  { %v503_v4 = vsub.f32 1.0, %v502_v54  ;;  %v622_v54 = vld [vmem:[#allocation11 + $0x38] sm:$0xff] }
  0x64   :  { %570 = vmatpush.msrb.mxu0 %v545_v23 }
  0x65   :  { %v504_v5 = vmul.f32 %v756_v3, %v503_v4  ;;  %v621_v4 = vld [vmem:[#allocation11 + $0x30] sm:$0xff] }
  0x66   :  { %571 = vmatpush.msrb.mxu0 %v544_v24  ;;  %v749_v24 = vld [vmem:[%s1129_s9] ss:$0 sm:$0xff] }
  0x67   :  { %v505_v6 = vadd.f32 %v756_v3, %v504_v5  ;;  %v620_v5 = vld [vmem:[#allocation11 + $0x28] sm:$0xff] }
  0x68   :  { %572 = vmatpush.msrb.mxu0 %v543_v25 }
  0x69   :  { %v1068_v7 = vsel %vm506_vm3, %v756_v3, %v505_v6  ;;  %v623_v3 = vld [vmem:[#allocation11 + $0x40] sm:$0xff]  ;;  %vm334_vm3 = vcmask 1043459  }
  0x6a   :  { %573 = vmatpush.msrb.mxu0 %v542_v26  ;;  %v619_v6 = vld [vmem:[#allocation11 + $0x20] sm:$0xff] }
  0x6c   :  { %574 = vmatpush.msrb.mxu0 %v541_v28 }
  0x6e   :  { %575 = vmatpush.msrb.mxu0 %v540_v29 }
  0xc8   :  { %v435_v58 = vpop.f32.mrf.mxu0 }
  0xc9   :  { %v436_v59 = vadd.f32 %v744_v57, %v435_v58 }
  0xcf   :  { %v475_v61 = vpop.f32.mrf.mxu2 }
  0xda   :  { %v495_v63 = vpop.f32.mrf.mxu3 }
  0xdd   :  { %v455_v60 = vpop.f32.mrf.mxu1 }
  0xde   :  { %v456_v62 = vadd.f32 %v455_v60, %v436_v59 }
  0xe0   :  { %v476_v0 = vadd.f32 %v475_v61, %v456_v62  ;;  %v630_v61 = vld [vmem:[#allocation11 + $0x78] sm:$0xff]  ;;  %v629_v62 = vld [vmem:[#allocation11 + $0x70] sm:$0xff] }
  0xe1   :  { %635 = vmatpush.msrb.mxu1 %v630_v61 }
  0xe2   :  { %v496_v46 = vadd.f32 %v495_v63, %v476_v0  ;;  %v628_v63 = vld [vmem:[#allocation11 + $0x68] sm:$0xff]  ;;  %v627_v0 = vld [vmem:[#allocation11 + $0x60] sm:$0xff] }
  0xe3   :  { %636 = vmatpush.msrb.mxu1 %v629_v62 }
  0xe4   :  { %v498_v1 = vsel %vm318_vm2, %v496_v46, 0.0 }
  0xe5   :  { %499 = vadd.xlane.f32.xlu0 %v498_v1  ;;  %637 = vmatpush.msrb.mxu1 %v628_v63  ;;  %v625_v1 = vld [vmem:[#allocation11 + $0x50] sm:$0xff]  ;;  %v326_v63 = vsel %vm322_vm1, %v1062_v56, %v1053_v45  ;;  %v754_v56 = vld [vmem:[#allocation2] ss:$0 sm:$0xff] }
  0xe7   :  { %638 = vmatpush.msrb.mxu1 %v627_v0  ;;  %v331_v0 = vrot.slane %v326_v63, 7 }
 0x158   :  { %v500_v8 = vpop.xlane.xlu0 %499 }
 0x159   :  { %v508_v9 = vmul.f32 %v1068_v7, %v500_v8  ;;  %v618_v8 = vld [vmem:[#allocation11 + $0x18] sm:$0xff] }
 0x15b   :  { %v509_v10 = vsub.f32 %v496_v46, %v508_v9  ;;  %v626_v46 = vld [vmem:[#allocation11 + $0x58] sm:$0xff]  ;;  %v617_v9 = vld [vmem:[#allocation11 + $0x10] sm:$0xff] }
 0x15c   :  { %639 = vmatpush.msrb.mxu1 %v626_v46  ;;  %v323_v46 = vsel %vm322_vm1, %v1057_v53, %v1051_v43 }
 0x15d   :  { %v510_v11 = vmul.f32 %v509_v10, %v509_v10 }
 0x15e   :  { %640 = vmatpush.msrb.mxu1 %v625_v1  ;;  %v333_v1 = vsel %vm332_vm0, %v331_v0, %v323_v46 }
 0x15f   :  { %v511_v12 = vsel %vm318_vm2, %v510_v11, 0.0  ;;  %v615_v11 = vld [vmem:[#allocation11] sm:$0xff] }
 0x160   :  { %512 = vadd.xlane.f32.xlu0 %v511_v12  ;;  %641 = vmatpush.msrb.mxu1 %v624_v2  ;;  %v335_v2 = vsel %vm334_vm3, %v331_v0, %v333_v1 }
 0x162   :  { %642 = vmatpush.msrb.mxu1 %v623_v3 }
 0x164   :  { %643 = vmatpush.msrb.mxu1 %v622_v54 }
 0x166   :  { %644 = vmatpush.msrb.mxu1 %v621_v4 }
 0x168   :  { %645 = vmatpush.msrb.mxu1 %v620_v5 }
 0x16a   :  { %646 = vmatpush.msrb.mxu1 %v619_v6 }
 0x16c   :  { %647 = vmatpush.msrb.mxu1 %v618_v8 }
 0x16e   :  { %648 = vmatpush.msrb.mxu1 %v617_v9 }
 0x1d3   :  { %v513_v30 = vpop.xlane.xlu0 %512 }
 0x1d4   :  { %v514_v32 = vmul.f32 %v513_v30, %v1068_v7  ;;  %v750_v30 = vld [vmem:[%s1131_s11] ss:$0 sm:$0xff] }
 0x1d6   :  { %v515_v33 = vadd.f32 1e-05, %v514_v32 }
 0x1d8   :  { %757 = vrsqrt.f32 %v515_v33  ;;  %vm522_vm5 = vweird.f32 %v515_v33 }
 0x1de   :  { %v758_v34 = vpop.eup %757 }
 0x1df   :  { %v517_v35 = vmul.f32 %v758_v34, %v515_v33  ;;  %vm523_vm4 = vweird.f32 %v758_v34 }
 0x1e0   :  { %vm524_vm6 = vmor %vm522_vm5, %vm523_vm4  ;;  %vm338_vm4 = vcmask 1047559  }
 0x1e1   :  { %v518_v36 = vmul.f32 %v758_v34, %v517_v35 }
 0x1e3   :  { %v519_v37 = vmul.f32 0.5, %v518_v36 }
 0x1e5   :  { %v520_v38 = vsub.f32 1.5, %v519_v37 }
 0x1e7   :  { %v521_v39 = vmul.f32 %v758_v34, %v520_v38 }
 0x1e9   :  { %v525_v41 = vsel %vm524_vm6, %v758_v34, %v521_v39  ;;  %vm708_vm6 = vcmask 1024  }
 0x1ea   :  { %v526_v42 = vmul.f32 %v525_v41, %v509_v10  ;;  %v616_v10 = vld [vmem:[#allocation11 + $0x8] sm:$0xff] }
 0x1eb   :  { %649 = vmatpush.msrb.mxu1 %v616_v10 }
 0x1ec   :  { %v531_v44 = vmul.f32 %v745_v40, %v526_v42 }
 0x1ed   :  { %650 = vmatpush.msrb.mxu1 %v615_v11 }
 0x1ee   :  { %v536_v47 = vadd.f32 %v746_v27, %v531_v44 }
 0x1f0   :  { %vm537_vm7 = vcmp.ge.f32.partialorder %v536_v47, 0.0  ;;  %v538_v48 = vmul.f32 0.01, %v536_v47 }
 0x1f2   :  { %v539_v49 = vsel %vm537_vm7, %v536_v47, %v538_v48 }
 0x1f3   :  { %576 = vmatmul.f32.vlgmr.msrb.gmra.mxu0 %v539_v49 }
 0x270   :  { %v577_v50 = vpop.f32.mrf.mxu0 }
 0x271   :  { %v578_v51 = vadd.f32 %v747_v31, %v577_v50  ;;  %v751_v50 = vld [vmem:[%s1132_s12] ss:$0 sm:$0xff]  ;;  %s925_s12 = smov [#allocation12]  }
 0x273   :  { %v580_v52 = vsel %vm318_vm2, %v578_v51, 0.0 }
 0x274   :  { %581 = vadd.xlane.f32.xlu1 %v580_v52 }
 0x2e7   :  { %v582_v55 = vpop.xlane.xlu1 %581 }
 0x2e8   :  { %v583_v57 = vmul.f32 %v582_v55, %v1068_v7 }
 0x2ea   :  { %v584_v58 = vsub.f32 %v578_v51, %v583_v57 }
 0x2ec   :  { %v585_v59 = vmul.f32 %v584_v58, %v584_v58 }
 0x2ee   :  { %v586_v60 = vsel %vm318_vm2, %v585_v59, 0.0 }
 0x2ef   :  { %587 = vadd.xlane.f32.xlu1 %v586_v60 }
 0x362   :  { %v588_v12 = vpop.xlane.xlu1 %587 }
 0x363   :  { %v589_v13 = vmul.f32 %v588_v12, %v1068_v7 }
 0x365   :  { %v590_v14 = vadd.f32 1e-05, %v589_v13 }
 0x367   :  { %759 = vrsqrt.f32 %v590_v14  ;;  %vm597_vm9 = vweird.f32 %v590_v14 }
 0x36d   :  { %v760_v15 = vpop.eup %759 }
 0x36e   :  { %v592_v16 = vmul.f32 %v760_v15, %v590_v14  ;;  %vm598_vm8 = vweird.f32 %v760_v15 }
 0x36f   :  { %vm599_vm10 = vmor %vm597_vm9, %vm598_vm8 }
 0x370   :  { %v593_v17 = vmul.f32 %v760_v15, %v592_v16 }
 0x372   :  { %v594_v18 = vmul.f32 0.5, %v593_v17 }
 0x374   :  { %v595_v19 = vsub.f32 1.5, %v594_v18 }
 0x376   :  { %v596_v20 = vmul.f32 %v760_v15, %v595_v19 }
 0x378   :  { %v600_v22 = vsel %vm599_vm10, %v760_v15, %v596_v20 }
 0x379   :  { %v601_v23 = vmul.f32 %v600_v22, %v584_v58  ;;  %v753_v58 = vld [vmem:[%s1134_s14] ss:$0 sm:$0xff]  ;;  %s1144_s14 = sld [smem:[#allocation20_spill]] }
 0x37b   :  { %v606_v25 = vmul.f32 %v748_v21, %v601_v23 }
 0x37d   :  { %v611_v26 = vadd.f32 %v749_v24, %v606_v25 }
 0x37f   :  { %vm612_vm11 = vcmp.ge.f32.partialorder %v611_v26, 0.0  ;;  %v613_v28 = vmul.f32 0.01, %v611_v26  ;;  %s719_s1 = sshll.u32 %s1144_s14, 4  ;;  %s720_s1 = int_to_ptr.hbm [resolvable:$true] %s719_s1 }
 0x381   :  { %v614_v29 = vsel %vm612_vm11, %v611_v26, %v613_v28 }
 0x382   :  { %651 = vmatmul.f32.vlgmr.msrb.gmra.mxu1 %v614_v29 }
 0x3ff   :  { %v652_v32 = vpop.f32.mrf.mxu1 }
 0x400   :  { %v653_v33 = vadd.f32 %v750_v30, %v652_v32 }
 0x402   :  { %v655_v34 = vsel %vm318_vm2, %v653_v33, 0.0 }
 0x403   :  { %656 = vadd.xlane.f32.xlu2 %v655_v34 }
 0x476   :  { %v657_v35 = vpop.xlane.xlu2 %656 }
 0x477   :  { %v658_v36 = vmul.f32 %v657_v35, %v1068_v7 }
 0x479   :  { %v659_v37 = vsub.f32 %v653_v33, %v658_v36 }
 0x47b   :  { %v660_v38 = vmul.f32 %v659_v37, %v659_v37 }
 0x47d   :  { %v661_v39 = vsel %vm318_vm2, %v660_v38, 0.0 }
 0x47e   :  { %662 = vadd.xlane.f32.xlu2 %v661_v39 }
 0x4f1   :  { %v663_v40 = vpop.xlane.xlu2 %662 }
 0x4f2   :  { %v664_v41 = vmul.f32 %v663_v40, %v1068_v7  ;;  %v752_v7 = vld [vmem:[%s1133_s13] ss:$0 sm:$0xff]  ;;  %s717_s13 = sshll.u32 %s925_s12, 4  ;;  %s718_s13 = int_to_ptr.vmem [resolvable:$true] %s717_s13 }
 0x4f4   :  { %v665_v42 = vadd.f32 1e-05, %v664_v41 }
 0x4f6   :  { %761 = vrsqrt.f32 %v665_v42  ;;  %vm672_vm13 = vweird.f32 %v665_v42 }
 0x4fc   :  { %v762_v27 = vpop.eup %761 }
 0x4fd   :  { %v667_v44 = vmul.f32 %v762_v27, %v665_v42  ;;  %vm673_vm12 = vweird.f32 %v762_v27 }
 0x4fe   :  { %vm674_vm14 = vmor %vm672_vm13, %vm673_vm12 }
 0x4ff   :  { %v668_v47 = vmul.f32 %v762_v27, %v667_v44 }
 0x501   :  { %v669_v48 = vmul.f32 0.5, %v668_v47 }
 0x503   :  { %v670_v49 = vsub.f32 1.5, %v669_v48 }
 0x505   :  { %v671_v31 = vmul.f32 %v762_v27, %v670_v49 }
 0x507   :  { %v675_v51 = vsel %vm674_vm14, %v762_v27, %v671_v31 }
 0x508   :  { %v676_v52 = vmul.f32 %v675_v51, %v659_v37 }
 0x50a   :  { %v681_v55 = vmul.f32 %v751_v50, %v676_v52 }
 0x50c   :  { %v686_v57 = vadd.f32 %v752_v7, %v681_v55 }
 0x50e   :  { %vm687_vm15 = vcmp.ge.f32.partialorder %v686_v57, 0.0  ;;  %v688_v59 = vmul.f32 0.01, %v686_v57 }
 0x510   :  { %v689_v60 = vsel %vm687_vm15, %v686_v57, %v688_v59 }
 0x511   :  { %v694_v61 = vmul.f32 %v753_v58, %v689_v60 }
 0x513   :  { %v695_v62 = vsel %vm318_vm2, %v694_v61, 0.0  ;;  %vm336_vm2 = vcmask 1045509  }
 0x514   :  { %696 = vadd.xlane.f32.xlu0 %v695_v62  ;;  %v337_v3 = vsel %vm336_vm2, %v331_v0, %v335_v2 }
 0x515   :  { %v339_v45 = vsel %vm338_vm4, %v331_v0, %v337_v3 }
 0x516   :  { %341 = vst [vmem:[#allocation12] sm:$0xff] %v339_v45 }
 0x517   :  { %722 = dma.vmem_to_hbm [thread:$0]  %s718_s13, 128, %s720_s1, [#allocation5]  }
 0x587   :  { %v697_v43 = vpop.xlane.xlu0 %696 }
 0x588   :  { %v702_v53 = vadd.f32 %v754_v56, %v697_v43 }
 0x58a   :  { %vm703_vm5 = vcmp.ge.f32.partialorder %v702_v53, 0.0  ;;  %v704_v54 = vmul.f32 0.01, %v702_v53 }
 0x58c   :  { %v705_v4 = vsel %vm703_vm5, %v702_v53, %v704_v54 }
 0x58d   :  { %v706_v5 = vmax.f32 %v705_v4, 0.01 }
 0x58f   :  { %v707_v6 = vmin.f32 %v706_v5, 100.0 }
 0x591   :  { %709 = vst.msk [vmem:[%s1145_s23] sm:$0x3] %vm708_vm6, %v707_v6 }
 0x592   :  { %913 = dma.done.wait [#allocation5], 128  }
 0x593   :  { %914 = vsyncadd [#allocation5], 4294967168 }
 0x594   :  { %729 = vsyncpa [#allocation4], 1 }
 0x595   :  { %730 = vsyncpa [#allocation7], 1 }
 0x596   :  { %731 = vsyncpa [#allocation10], 1 }
 0x597   :  { %732 = vsyncpa [#allocation5], 1 }

</bundles_post_ra>
